<compile_context>
chip_gen: v6e
topology: v6e:2x2x1
jax: 0.10.0
libtpu: 0.0.40
codegen_flags: <defaults>
</compile_context>

<pallas_src>
import math
import functools

import jax
import jax.numpy as jnp
from jax.experimental import pallas as pl
from jax.experimental.pallas import tpu as pltpu


def _round_up(v, m):
    return ((v + m - 1) // m) * m


def _fused_mlp_kernel(*refs, activations):
    """Fused MLP over one batch tile. refs = (x, w1, b1, w2, b2, ..., out)."""
    x_ref = refs[0]
    o_ref = refs[-1]
    wb = refs[1:-1]
    y = x_ref[...]
    for i, act in enumerate(activations):
        w_ref = wb[2 * i]
        b_ref = wb[2 * i + 1]
        # bf16 operands on the MXU, f32 accumulation; bias add / activation on
        # the VPU (f32).
        y = jnp.dot(y.astype(w_ref.dtype), w_ref[...],
                    preferred_element_type=jnp.float32)
        y = y + b_ref[...].astype(jnp.float32)
        if act == "relu":
            y = jnp.maximum(y, 0.0)
        elif act == "tanh":
            y = jnp.tanh(y)
        elif act == "sigmoid":
            y = jax.nn.sigmoid(y)
        # "linear": no-op
    o_ref[...] = y.astype(o_ref.dtype)


def prepare_params(params, compute_dtype=jnp.bfloat16):
    """One-time conversion (do this at init, NOT per forward call).

    w -> [in, out] in compute_dtype (bf16 for the MXU), b -> (1, out) float32.
    Keeping this out of the per-call path avoids per-call HBM copy passes.
    """
    prepped = []
    for w, b in params:
        prepped.append((jnp.asarray(w, compute_dtype),
                        jnp.asarray(b, jnp.float32).reshape(1, -1)))
    return prepped


def generic_feed_forward(x, prepared_params, activations, *, batch_tile=1024):
    """Forward pass matching GenericFeedForwardNetwork.forward (use_batch_norm=False).

    Single fused Pallas kernel: all layer weights resident in VMEM (constant
    index_map), batch tiled and marked parallel.
    """
    # TODO(synk): use_batch_norm=True path (nn.BatchNorm1d with running stats)
    # not implemented; default constructor arg is False.
    assert len(prepared_params) == len(activations)
    for act in activations:
        assert act in ("relu", "linear", "tanh", "sigmoid"), \
            f"unsupported activation {act}"

    batch, din = x.shape
    assert prepared_params[0][0].shape[0] == din
    dout = prepared_params[-1][0].shape[1]
    itemsize = jnp.dtype(x.dtype).itemsize

    # ---- Batch tiling: no padding of the batch dimension. ----
    batch_tile = _round_up(max(batch_tile, 8), 8)
    if batch > batch_tile:
        tb = batch_tile
    elif batch >= 256:
        # Split into >=2 tiles so ("parallel",) can shard across v7x's 2 TCs.
        tb = _round_up(pl.cdiv(batch, 2), 8)
    else:
        tb = batch  # block dim == full array dim: always a legal BlockSpec.
    grid = (pl.cdiv(batch, tb),)

    # ---- BlockSpecs: x/out walk batch tiles; weights/biases stay resident. ----
    # Feature dims are left unpadded: last block dim == full array dim is legal,
    # and Mosaic handles small K/N in-kernel. Weights are full-array blocks with
    # a constant index_map so they are DMA'd once and reused across grid steps.
    in_specs = [pl.BlockSpec((tb, din), lambda i: (i, 0))]
    flat_wb = []
    for (w, b) in prepared_params:
        # NOTE: pipeline_mode=pl.Buffered(1) would single-buffer these
        # grid-invariant blocks (halves their VMEM cost on v7x).
        in_specs.append(pl.BlockSpec(w.shape, lambda i: (0, 0)))
        in_specs.append(pl.BlockSpec(b.shape, lambda i: (0, 0)))
        flat_wb.extend([w, b])
    out_specs = pl.BlockSpec((tb, dout), lambda i: (i, 0))

    # ---- Explicit VMEM budget (guards v7x's 64 MiB physical VMEM). ----
    param_bytes = sum(w.size * w.dtype.itemsize + b.size * b.dtype.itemsize
                      for w, b in prepared_params)
    x_tile_bytes = tb * din * itemsize
    out_tile_bytes = tb * dout * itemsize
    max_width = max(w.shape[1] for w, _ in prepared_params)
    interm_bytes = tb * _round_up(max_width, 128) * 4 * 2  # f32 + bf16 staging
    # Everything double-buffered by default (conservative) + headroom.
    vmem_budget = 2 * (x_tile_bytes + out_tile_bytes + param_bytes) + interm_bytes
    assert vmem_budget <= 48 * 1024 * 1024, (
        "Resident weights + tiles exceed a safe VMEM budget for v7x "
        f"({vmem_budget} bytes); reduce batch_tile or layer widths.")
    vmem_limit = min(max(vmem_budget + (8 << 20), 16 << 20), 100 << 20)

    # ---- Advisory cost estimate from TRUE (unpadded) dims. ----
    flops = 2 * batch * sum(w.shape[0] * w.shape[1] for w, _ in prepared_params)
    transcendentals = sum(batch * w.shape[1]
                          for (w, _), act in zip(prepared_params, activations)
                          if act in ("tanh", "sigmoid"))
    bytes_accessed = (batch * din * itemsize
                      + batch * dout * itemsize
                      + param_bytes)
    cost = pl.CostEstimate(flops=flops, transcendentals=transcendentals,
                           bytes_accessed=bytes_accessed)

    kernel = functools.partial(_fused_mlp_kernel, activations=tuple(activations))
    out = pl.pallas_call(
        kernel,
        out_shape=jax.ShapeDtypeStruct((batch, dout), x.dtype),
        grid_spec=pl.GridSpec(
            grid=grid,
            in_specs=in_specs,
            out_specs=out_specs,
        ),
        compiler_params=pltpu.CompilerParams(
            dimension_semantics=("parallel",),
            vmem_limit_bytes=vmem_limit,
        ),
        cost_estimate=cost,
    )(x, *flat_wb)

    return out


def init_params(key, layers, activations):
    """Deterministic replica of guassian_fill_w_gain + zero bias.

    Returns list of (w, b) with w shaped [in, out] (transposed vs. PyTorch).
    """
    params = []
    for i, dout in enumerate(layers[1:]):
        din = layers[i]
        gain = math.sqrt(2.0) if activations[i] == "relu" else 1.0
        std = gain * math.sqrt(1.0 / din)
        key, sub = jax.random.split(key)
        w = std * jax.random.normal(sub, (din, dout), dtype=jnp.float32)
        b = jnp.zeros((dout,), dtype=jnp.float32)
        params.append((w, b))
    return params


if __name__ == "__main__":
    # Network schema: layers=[32, 64, 32, 8], activations=['relu','relu','linear']
    layers = [32, 64, 32, 8]
    activations = ["relu", "relu", "linear"]

    key = jax.random.PRNGKey(0)
    key, xkey = jax.random.split(key)
    batch = 4
    x = jax.random.normal(xkey, (batch, layers[0]), dtype=jnp.float32)

    params = init_params(key, layers, activations)
    prepared = prepare_params(params)  # one-time bf16 weight prep (init time)

    out = generic_feed_forward(x, prepared, activations)
    out = jax.block_until_ready(out)
    assert out.shape == (batch, layers[-1])
    assert out.dtype == x.dtype

    # Reference 1: same mixed precision as the kernel (bf16 MXU, f32 accum).
    ref_bf16 = x
    for (w, b), act in zip(params, activations):
        ref_bf16 = jnp.dot(ref_bf16.astype(jnp.bfloat16), w.astype(jnp.bfloat16),
                           preferred_element_type=jnp.float32) + b
        if act == "relu":
            ref_bf16 = jnp.maximum(ref_bf16, 0.0)
    assert jnp.allclose(out, ref_bf16, atol=2e-3, rtol=2e-3)

    # Reference 2: full f32 (HIGHEST) — looser tolerance for the bf16 MXU path.
    ref_f32 = x
    for (w, b), act in zip(params, activations):
        ref_f32 = jnp.dot(ref_f32, w, precision=jax.lax.Precision.HIGHEST) + b
        if act == "relu":
            ref_f32 = jnp.maximum(ref_f32, 0.0)
    assert jnp.allclose(out, ref_f32, atol=1e-1, rtol=1e-1)

    print("KERNEL_OK")
</pallas_src>

<mosaic_0001>
module attributes {stable_mosaic.version = 11 : i64} {
  func.func @_fused_mlp_kernel(%arg0: i32, %arg1: memref<4x32xf32, #tpu.memory_space<vmem>>, %arg2: memref<32x64xbf16, #tpu.memory_space<vmem>>, %arg3: memref<1x64xf32, #tpu.memory_space<vmem>>, %arg4: memref<64x32xbf16, #tpu.memory_space<vmem>>, %arg5: memref<1x32xf32, #tpu.memory_space<vmem>>, %arg6: memref<32x8xbf16, #tpu.memory_space<vmem>>, %arg7: memref<1x8xf32, #tpu.memory_space<vmem>>, %arg8: memref<4x8xf32, #tpu.memory_space<vmem>>) attributes {dimension_semantics = [#tpu.dimension_semantics<parallel>], iteration_bounds = array<i64: 1>, scalar_prefetch = 0 : i64, scratch_operands = 0 : i64, tpu.core_type = #tpu.core_type<tc>, window_params = [{transform_indices = @transform_0, window_bounds = array<i64: 4, 32>}, {pipeline_mode = #tpu.pipeline_mode<synchronous>, transform_indices = @transform_1, window_bounds = array<i64: 32, 64>}, {pipeline_mode = #tpu.pipeline_mode<synchronous>, transform_indices = @transform_2, window_bounds = array<i64: 1, 64>}, {pipeline_mode = #tpu.pipeline_mode<synchronous>, transform_indices = @transform_3, window_bounds = array<i64: 64, 32>}, {pipeline_mode = #tpu.pipeline_mode<synchronous>, transform_indices = @transform_4, window_bounds = array<i64: 1, 32>}, {pipeline_mode = #tpu.pipeline_mode<synchronous>, transform_indices = @transform_5, window_bounds = array<i64: 32, 8>}, {pipeline_mode = #tpu.pipeline_mode<synchronous>, transform_indices = @transform_6, window_bounds = array<i64: 1, 8>}, {transform_indices = @transform_7, window_bounds = array<i64: 4, 8>}]} {
    %c0 = arith.constant 0 : index
    %c0_0 = arith.constant 0 : index
    %0 = vector.load %arg1[%c0, %c0_0] : memref<4x32xf32, #tpu.memory_space<vmem>>, vector<4x32xf32>
    %1 = arith.truncf %0 : vector<4x32xf32> to vector<4x32xbf16>
    %c0_1 = arith.constant 0 : index
    %c0_2 = arith.constant 0 : index
    %2 = vector.load %arg2[%c0_1, %c0_2] : memref<32x64xbf16, #tpu.memory_space<vmem>>, vector<32x64xbf16>
    %cst = arith.constant dense<0.000000e+00> : vector<4x64xf32>
    %3 = tpu.matmul %1, %2, %cst {dimension_numbers = #tpu.dot_dimension_numbers<[1], [0], [0], [1], [0, 0, 1, 1], [], []>} : vector<4x32xbf16>, vector<32x64xbf16>, vector<4x64xf32> -> vector<4x64xf32>
    %c0_3 = arith.constant 0 : index
    %c0_4 = arith.constant 0 : index
    %4 = vector.load %arg3[%c0_3, %c0_4] : memref<1x64xf32, #tpu.memory_space<vmem>>, vector<1x64xf32>
    %5 = vector.broadcast %4 : vector<1x64xf32> to vector<4x64xf32>
    %6 = arith.addf %3, %5 : vector<4x64xf32>
    %cst_5 = arith.constant 0.000000e+00 : f32
    %7 = vector.broadcast %cst_5 : f32 to vector<4x64xf32>
    %8 = arith.maximumf %6, %7 : vector<4x64xf32>
    %9 = arith.truncf %8 : vector<4x64xf32> to vector<4x64xbf16>
    %c0_6 = arith.constant 0 : index
    %c0_7 = arith.constant 0 : index
    %10 = vector.load %arg4[%c0_6, %c0_7] : memref<64x32xbf16, #tpu.memory_space<vmem>>, vector<64x32xbf16>
    %cst_8 = arith.constant dense<0.000000e+00> : vector<4x32xf32>
    %11 = tpu.matmul %9, %10, %cst_8 {dimension_numbers = #tpu.dot_dimension_numbers<[1], [0], [0], [1], [0, 0, 1, 1], [], []>} : vector<4x64xbf16>, vector<64x32xbf16>, vector<4x32xf32> -> vector<4x32xf32>
    %c0_9 = arith.constant 0 : index
    %c0_10 = arith.constant 0 : index
    %12 = vector.load %arg5[%c0_9, %c0_10] : memref<1x32xf32, #tpu.memory_space<vmem>>, vector<1x32xf32>
    %13 = vector.broadcast %12 : vector<1x32xf32> to vector<4x32xf32>
    %14 = arith.addf %11, %13 : vector<4x32xf32>
    %cst_11 = arith.constant 0.000000e+00 : f32
    %15 = vector.broadcast %cst_11 : f32 to vector<4x32xf32>
    %16 = arith.maximumf %14, %15 : vector<4x32xf32>
    %17 = arith.truncf %16 : vector<4x32xf32> to vector<4x32xbf16>
    %c0_12 = arith.constant 0 : index
    %c0_13 = arith.constant 0 : index
    %18 = vector.load %arg6[%c0_12, %c0_13] : memref<32x8xbf16, #tpu.memory_space<vmem>>, vector<32x8xbf16>
    %cst_14 = arith.constant dense<0.000000e+00> : vector<4x8xf32>
    %19 = tpu.matmul %17, %18, %cst_14 {dimension_numbers = #tpu.dot_dimension_numbers<[1], [0], [0], [1], [0, 0, 1, 1], [], []>} : vector<4x32xbf16>, vector<32x8xbf16>, vector<4x8xf32> -> vector<4x8xf32>
    %c0_15 = arith.constant 0 : index
    %c0_16 = arith.constant 0 : index
    %20 = vector.load %arg7[%c0_15, %c0_16] : memref<1x8xf32, #tpu.memory_space<vmem>>, vector<1x8xf32>
    %21 = vector.broadcast %20 : vector<1x8xf32> to vector<4x8xf32>
    %22 = arith.addf %19, %21 : vector<4x8xf32>
    %c0_17 = arith.constant 0 : index
    %c0_18 = arith.constant 0 : index
    %23 = vector.load %arg8[%c0_17, %c0_18] : memref<4x8xf32, #tpu.memory_space<vmem>>, vector<4x8xf32>
    tpu.vector_store %arg8[%c0_17, %c0_18], %22 {strides = array<i32>} : memref<4x8xf32, #tpu.memory_space<vmem>>, vector<4x8xf32>,
    return
  }
  func.func @transform_0(%arg0: i32) -> (i32, i32) {
    %c0_i32 = arith.constant 0 : i32
    %c0_i32_0 = arith.constant 0 : i32
    return %arg0, %c0_i32 : i32, i32
  }
  func.func @transform_1(%arg0: i32) -> (i32, i32) {
    %c0_i32 = arith.constant 0 : i32
    %c0_i32_0 = arith.constant 0 : i32
    %c0_i32_1 = arith.constant 0 : i32
    return %c0_i32, %c0_i32_0 : i32, i32
  }
  func.func @transform_2(%arg0: i32) -> (i32, i32) {
    %c0_i32 = arith.constant 0 : i32
    %c0_i32_0 = arith.constant 0 : i32
    %c0_i32_1 = arith.constant 0 : i32
    return %c0_i32, %c0_i32_0 : i32, i32
  }
  func.func @transform_3(%arg0: i32) -> (i32, i32) {
    %c0_i32 = arith.constant 0 : i32
    %c0_i32_0 = arith.constant 0 : i32
    %c0_i32_1 = arith.constant 0 : i32
    return %c0_i32, %c0_i32_0 : i32, i32
  }
  func.func @transform_4(%arg0: i32) -> (i32, i32) {
    %c0_i32 = arith.constant 0 : i32
    %c0_i32_0 = arith.constant 0 : i32
    %c0_i32_1 = arith.constant 0 : i32
    return %c0_i32, %c0_i32_0 : i32, i32
  }
  func.func @transform_5(%arg0: i32) -> (i32, i32) {
    %c0_i32 = arith.constant 0 : i32
    %c0_i32_0 = arith.constant 0 : i32
    %c0_i32_1 = arith.constant 0 : i32
    return %c0_i32, %c0_i32_0 : i32, i32
  }
  func.func @transform_6(%arg0: i32) -> (i32, i32) {
    %c0_i32 = arith.constant 0 : i32
    %c0_i32_0 = arith.constant 0 : i32
    %c0_i32_1 = arith.constant 0 : i32
    return %c0_i32, %c0_i32_0 : i32, i32
  }
  func.func @transform_7(%arg0: i32) -> (i32, i32) {
    %c0_i32 = arith.constant 0 : i32
    %c0_i32_0 = arith.constant 0 : i32
    return %arg0, %c0_i32 : i32, i32
  }
}

</mosaic_0001>

<bundles_post_ra>
// kernel: tpu_custom_call.1
= control target key start
LH: loop header
LB: loop body
LE: loop exit
PB: predicated region body
PF: predicated region fallthrough
CT: control target
= control target key end

     0   :  { %v352_v1 = vmov 0.0   ;;  %vm353_vm0 = vmmov 0   ;;  %vm53_vm1 = vcmask 261120   ;;  %s439_s0 = inlined_call_operand.vmem [shape: f32[4,32], index: 0, kind: input, shape index: {}]   ;;  %s440_s1 = inlined_call_operand.vmem [shape: bf16[32,64], index: 1, kind: input, shape index: {}]   ;;  %s441_s2 = inlined_call_operand.vmem [shape: f32[1,64], index: 2, kind: input, shape index: {}]   ;;  %s442_s3 = inlined_call_operand.vmem [shape: bf16[64,32], index: 3, kind: input, shape index: {}]   ;;  %s443_s4 = inlined_call_operand.vmem [shape: f32[1,32], index: 4, kind: input, shape index: {}]   ;;  %s444_s5 = inlined_call_operand.vmem [shape: bf16[32,8], index: 5, kind: input, shape index: {}]   ;;  %s445_s6 = inlined_call_operand.vmem [shape: f32[1,8], index: 6, kind: input, shape index: {}]   ;;  %s446_s7 = inlined_call_operand.hbm [shape: f32[4,8], index: 7, kind: output, shape index: {}]  }
   0x1   :  { %v322_v0 = vld [vmem:[%s440_s1 + $0x8] sm:$0xff]   ;;  %291 = vmatprep.subr.bf16.mxu0 %v352_v1  ;;  %v323_v2 = vld [vmem:[%s440_s1] sm:$0xff]   ;;  %299 = vmatprep.subr.bf16.mxu1 %v352_v1  ;;  %v324_v4 = vld [vmem:[%s442_s3 + $0x18] sm:$0xff]  }
   0x2   :  { %292 = vmatpush3.bf16.msra.mxu0 %v322_v0  ;;  %295 = vmatprep.mubr.msk.bf16.mxu0 %vm353_vm0, %v352_v1  ;;  %v28_v3 = vld [vmem:[%s439_s0] sm:$0xf]  ;;  %v325_v5 = vld [vmem:[%s442_s3 + $0x10] sm:$0xff]  }
   0x3   :  { %293 = vmatprep.subr.bf16.mxu0 %v352_v1  ;;  %307 = vmatprep.mubr.msk.bf16.mxu1 %vm353_vm0, %v352_v1  ;;  %v29_v6 = vpack.c.bf16 %v28_v3, %v28_v3 }
   0x4   :  { %300 = vmatpush3.bf16.msra.mxu1 %v324_v4 }
   0x5   :  { %301 = vmatprep.subr.bf16.mxu1 %v352_v1 }
   0x6   :  { %294 = vmatpush3.bf16.msra.mxu0 %v323_v2 }
   0x7   :  { %311 = vmatprep.subr.bf16.mxu0 %v352_v1 }
   0x8   :  { %12 = vsyncpa [#allocation3], 0  ;;  %302 = vmatpush3.bf16.msra.mxu1 %v325_v5  ;;  %v326_v7 = vld [vmem:[%s442_s3 + $0x8] sm:$0xff]   ;;  %v327_v8 = vld [vmem:[%s442_s3] sm:$0xff]   ;;  %vm138_vm2 = vcmask 523264   ;;  %s354_s21 = smov [#allocation2]  }
   0x9   :  { %296 = vmatmul.mubr.msk.bf16.vlgmr.msra.gmra.mxu0 %vm53_vm1, %v29_v6  ;;  %303 = vmatprep.subr.bf16.mxu1 %v352_v1  ;;  %v328_v9 = vld [vmem:[%s444_s5 + $0x8] sm:$0xff]   ;;  %v266_v10 = vld [vmem:[%s441_s2] ss:$0 sm:$0xff]  ;;  %vm250_vm3 = vcmask 60416  }
   0xa   :  { %315 = vmatprep.mubr.msk.bf16.mxu0 %vm353_vm0, %v352_v1  ;;  %312 = vmatpush3.bf16.msra.mxu0 %v328_v9  ;;  %v329_v18 = vld [vmem:[%s444_s5] sm:$0xff]   ;;  %s258_s5 = sshll.u32 %s354_s21, 4  ;;  %s259_s5 = int_to_ptr.vmem [resolvable:$true] %s258_s5 }
   0xb   :  { %313 = vmatprep.subr.bf16.mxu0 %v352_v1  ;;  %v270_v19 = vld [vmem:[%s443_s4] ss:$0 sm:$0xff]  ;;  %s330_s4 = scalar_lea.vmem %s259_s5, 64  ;;  %p335_p1 = scmp.lt.s32.totalorder %s259_s5, %s259_s5 }
   0xc   :  { %304 = vmatpush3.bf16.msra.mxu1 %v326_v7  ;;  %v276_v27 = vld [vmem:[%s445_s6] ss:$0 sm:$0xff]  ;;  %p331_p0 = scmp.ne.s32.totalorder %s259_s5, %s330_s4  ;;  %p336_p2 = scmp.lt.s32.totalorder %s330_s4, %s330_s4 }
   0xd   :  { %305 = vmatprep.subr.bf16.mxu1 %v352_v1 }
   0xe   :  { %314 = vmatpush3.bf16.msra.mxu0 %v329_v18  ;;  %p337_p3 = por %p336_p2, %p335_p1 }
  0x10   :  { %306 = vmatpush3.bf16.msra.mxu1 %v327_v8  ;;  %p338_p4 = pnand %p337_p3, %p331_p0 }
  0xc9   :  { %v91_v11 = vpop.f32.mrf.mxu0 }
  0xca   :  { %v92_v12 = vadd.f32 %v266_v10, %v91_v11 }
  0xcb   :  { %v297_v13 = vpop.f32.mrf.mxu0 }
  0xcc   :  { %v97_v14 = vmax.f32 %v92_v12, 0.0 }
  0xcd   :  { %v94_v15 = vpop.f32.mrf.mxu0 }
  0xce   :  { %v98_v16 = vpack.c.bf16 %v97_v14, %v97_v14 }
  0xcf   :  { %v298_v17 = vpop.f32.mrf.mxu0 }
  0xd0   :  { %308 = vmatmul.mubr.msk.bf16.vlgmr.msra.gmra.mxu1 %vm138_vm2, %v98_v16 }
 0x190   :  { %v176_v20 = vpop.f32.mrf.mxu1 }
 0x191   :  { %v177_v21 = vadd.f32 %v270_v19, %v176_v20 }
 0x192   :  { %v309_v22 = vpop.f32.mrf.mxu1 }
 0x193   :  { %v182_v23 = vmax.f32 %v177_v21, 0.0 }
 0x194   :  { %v179_v24 = vpop.f32.mrf.mxu1 }
 0x195   :  { %v183_v25 = vpack.c.bf16 %v182_v23, %v182_v23 }
 0x196   :  { %v310_v26 = vpop.f32.mrf.mxu1 }
 0x197   :  { %316 = vmatmul.mubr.msk.bf16.vlgmr.msra.gmra.mxu0 %vm53_vm1, %v183_v25 }
 0x257   :  { %v244_v28 = vpop.f32.mrf.mxu0 }
 0x258   :  { %v245_v29 = vadd.f32 %v276_v27, %v244_v28 }
 0x259   :  { %v317_v30 = vpop.f32.mrf.mxu0 }
 0x25a   :  { %251 = vst.msk [vmem:[#allocation2] sm:$0xf] %vm250_vm3, %v245_v29 }
 0x25b   :  { %v247_v31 = vpop.f32.mrf.mxu0 }
 0x25c   :  { %341 = shalt.err (!%p338_p4)
}
 0x25d   :  { %261 = dma.vmem_to_hbm [thread:$0]  %s259_s5, 64, %s446_s7, [#allocation3]   ;;  %v318_v32 = vpop.f32.mrf.mxu0 }
 0x25e   :  { %350 = dma.done.wait [#allocation3], 64  }
 0x25f   :  { %351 = vsyncadd [#allocation3], 4294967232 }
 0x260   :  { %265 = vsyncpa [#allocation3], 1 }

</bundles_post_ra>
